<compile_context>
chip_gen: v5e
topology: v5e:2x2
jax: 0.10.0
libtpu: 0.0.40
codegen_flags: <defaults>
</compile_context>

<pallas_src>
import jax
import jax.numpy as jnp
from jax.experimental import pallas as pl
from jax.experimental.pallas import tpu as pltpu

_LN_EPS = 1e-5
_INV_SQRT2 = 0.7071067811865476


def _projection_head_kernel(x_ref, w1_ref, b1_ref, w2_ref, b2_ref,
                            gamma_ref, beta_ref, o_ref):
    # --- projection = Linear(embedding_dim -> projection_dim) ---------------
    # MXU matmul in the operands' native dtype, f32 accumulation.
    projected = jnp.dot(x_ref[...], w1_ref[...],
                        preferred_element_type=jnp.float32)
    projected = projected + b1_ref[...].astype(jnp.float32)

    # --- exact GELU (erf form), matches torch.nn.GELU() default -------------
    h = 0.5 * projected * (1.0 + jax.lax.erf(projected * _INV_SQRT2))

    # --- fc = Linear(projection_dim -> projection_dim) ----------------------
    # Narrow back to the weight dtype for the MXU (no-op for f32 weights).
    y = jnp.dot(h.astype(w2_ref.dtype), w2_ref[...],
                preferred_element_type=jnp.float32)
    y = y + b2_ref[...].astype(jnp.float32)

    # --- dropout (eval) -> identity, then residual ---------------------------
    y = y + projected

    # --- LayerNorm over last dim (f32 math) ----------------------------------
    mean = jnp.mean(y, axis=-1, keepdims=True)
    centered = y - mean
    var = jnp.mean(centered * centered, axis=-1, keepdims=True)
    normed = centered * jax.lax.rsqrt(var + _LN_EPS)
    out = normed * gamma_ref[...].astype(jnp.float32) \
        + beta_ref[...].astype(jnp.float32)

    o_ref[...] = out.astype(o_ref.dtype)


def prepare_projection_head_params(w1, b1, w2, b2, gamma, beta):
    """One-time parameter preparation (hoisted out of the per-call path).

    w1: [P, E] (PyTorch nn.Linear layout), b1: [P],
    w2: [P, P],                            b2: [P],
    gamma/beta: [P].
    Returns pre-transposed / lane-major [1, P] arrays ready for the kernel.
    """
    P = w1.shape[0]
    return (
        jnp.asarray(w1).T,              # [E, P]
        jnp.asarray(b1).reshape(1, P),  # [1, P]
        jnp.asarray(w2).T,              # [P, P]
        jnp.asarray(b2).reshape(1, P),
        jnp.asarray(gamma).reshape(1, P),
        jnp.asarray(beta).reshape(1, P),
    )


def _pick_tile_b(B):
    # Largest batch tile (<=512 rows, multiple of 8) that divides B; the 512
    # cap keeps streamed tiles + f32 intermediates well inside scoped VMEM
    # (v7x included) while staying near the HBM roofline.
    for t in (512, 256, 128, 64, 32, 16, 8):
        if B % t == 0:
            return t
    return B  # tiny / ragged batch: single block equal to the full dim


def projection_head(x, w1_t, b1_r, w2_t, b2_r, gamma_r, beta_r):
    """x: [B, E]; w1_t: [E, P]; w2_t: [P, P]; 1-D params pre-lifted to [1, P]."""
    B, E = x.shape
    P = w1_t.shape[1]

    tile_b = _pick_tile_b(B)
    grid = (B // tile_b,) if B % tile_b == 0 else (1,)

    # Streamed operands: x / out tiled along the batch axis.
    x_spec = pl.BlockSpec((tile_b, E), lambda i: (i, 0))
    o_spec = pl.BlockSpec((tile_b, P), lambda i: (i, 0))
    # Resident operands: weights / biases / LayerNorm affine params
    # (constant index_map -> fetched once, kept in VMEM across the grid).
    w1_spec = pl.BlockSpec((E, P), lambda i: (0, 0))
    w2_spec = pl.BlockSpec((P, P), lambda i: (0, 0))
    row_spec = pl.BlockSpec((1, P), lambda i: (0, 0))

    return pl.pallas_call(
        _projection_head_kernel,
        out_shape=jax.ShapeDtypeStruct((B, P), x.dtype),
        grid=grid,
        in_specs=[x_spec, w1_spec, row_spec, w2_spec, row_spec,
                  row_spec, row_spec],
        out_specs=o_spec,
        compiler_params=pltpu.CompilerParams(
            dimension_semantics=("parallel",)),
    )(x, w1_t, b1_r, w2_t, b2_r, gamma_r, beta_r)


def _reference(x, w1, b1, w2, b2, gamma, beta):
    x = x.astype(jnp.float32)
    projected = x @ w1.T.astype(jnp.float32) + b1
    h = 0.5 * projected * (1.0 + jax.lax.erf(projected * _INV_SQRT2))
    y = h @ w2.T.astype(jnp.float32) + b2
    y = y + projected
    mean = jnp.mean(y, axis=-1, keepdims=True)
    var = jnp.mean((y - mean) ** 2, axis=-1, keepdims=True)
    return (y - mean) * jax.lax.rsqrt(var + _LN_EPS) * gamma + beta


if __name__ == "__main__":
    # Small shapes consistent with the module: batch=8, embedding_dim=32,
    # projection_dim=128 (lane-aligned).
    B, E, P = 8, 32, 128

    key = jax.random.PRNGKey(0)
    k_x, k_w1, k_b1, k_w2, k_b2 = jax.random.split(key, 5)

    x = jax.random.normal(k_x, (B, E), dtype=jnp.float32)
    w1 = 0.02 * jax.random.normal(k_w1, (P, E), dtype=jnp.float32)
    b1 = 0.02 * jax.random.normal(k_b1, (P,), dtype=jnp.float32)
    w2 = 0.02 * jax.random.normal(k_w2, (P, P), dtype=jnp.float32)
    b2 = 0.02 * jax.random.normal(k_b2, (P,), dtype=jnp.float32)
    gamma = jnp.ones((P,), dtype=jnp.float32)
    beta = jnp.zeros((P,), dtype=jnp.float32)

    # One-time parameter preparation (transpose / reshape hoisted out of the
    # per-call path).
    params = prepare_projection_head_params(w1, b1, w2, b2, gamma, beta)

    out = projection_head(x, *params)
    jax.block_until_ready(out)

    # Sanity: shape, finiteness, and numerical parity with a pure-JAX ref.
    assert out.shape == (B, P)
    assert bool(jnp.all(jnp.isfinite(out)))
    ref = _reference(x, w1, b1, w2, b2, gamma, beta)
    assert bool(jnp.allclose(out.astype(jnp.float32), ref, atol=1e-4, rtol=1e-4))

    print("KERNEL_OK")
</pallas_src>

<mosaic_0001>
module attributes {stable_mosaic.version = 11 : i64} {
  func.func @_projection_head_kernel(%arg0: i32, %arg1: memref<8x32xf32, #tpu.memory_space<vmem>>, %arg2: memref<32x128xf32, #tpu.memory_space<vmem>>, %arg3: memref<1x128xf32, #tpu.memory_space<vmem>>, %arg4: memref<128x128xf32, #tpu.memory_space<vmem>>, %arg5: memref<1x128xf32, #tpu.memory_space<vmem>>, %arg6: memref<1x128xf32, #tpu.memory_space<vmem>>, %arg7: memref<1x128xf32, #tpu.memory_space<vmem>>, %arg8: memref<8x128xf32, #tpu.memory_space<vmem>>) attributes {dimension_semantics = [#tpu.dimension_semantics<parallel>], iteration_bounds = array<i64: 1>, scalar_prefetch = 0 : i64, scratch_operands = 0 : i64, tpu.core_type = #tpu.core_type<tc>, window_params = [{transform_indices = @transform_0, window_bounds = array<i64: 8, 32>}, {pipeline_mode = #tpu.pipeline_mode<synchronous>, transform_indices = @transform_1, window_bounds = array<i64: 32, 128>}, {pipeline_mode = #tpu.pipeline_mode<synchronous>, transform_indices = @transform_2, window_bounds = array<i64: 1, 128>}, {pipeline_mode = #tpu.pipeline_mode<synchronous>, transform_indices = @transform_3, window_bounds = array<i64: 128, 128>}, {pipeline_mode = #tpu.pipeline_mode<synchronous>, transform_indices = @transform_4, window_bounds = array<i64: 1, 128>}, {pipeline_mode = #tpu.pipeline_mode<synchronous>, transform_indices = @transform_5, window_bounds = array<i64: 1, 128>}, {pipeline_mode = #tpu.pipeline_mode<synchronous>, transform_indices = @transform_6, window_bounds = array<i64: 1, 128>}, {transform_indices = @transform_7, window_bounds = array<i64: 8, 128>}]} {
    %c0 = arith.constant 0 : index
    %c0_0 = arith.constant 0 : index
    %0 = vector.load %arg1[%c0, %c0_0] : memref<8x32xf32, #tpu.memory_space<vmem>>, vector<8x32xf32>
    %c0_1 = arith.constant 0 : index
    %c0_2 = arith.constant 0 : index
    %1 = vector.load %arg2[%c0_1, %c0_2] : memref<32x128xf32, #tpu.memory_space<vmem>>, vector<32x128xf32>
    %cst = arith.constant dense<0.000000e+00> : vector<8x128xf32>
    %2 = tpu.matmul %0, %1, %cst {dimension_numbers = #tpu.dot_dimension_numbers<[1], [0], [0], [1], [0, 0, 1, 1], [], []>} : vector<8x32xf32>, vector<32x128xf32>, vector<8x128xf32> -> vector<8x128xf32>
    %c0_3 = arith.constant 0 : index
    %c0_4 = arith.constant 0 : index
    %3 = vector.load %arg3[%c0_3, %c0_4] : memref<1x128xf32, #tpu.memory_space<vmem>>, vector<1x128xf32>
    %4 = vector.broadcast %3 : vector<1x128xf32> to vector<8x128xf32>
    %5 = arith.addf %2, %4 : vector<8x128xf32>
    %cst_5 = arith.constant 5.000000e-01 : f32
    %6 = vector.broadcast %cst_5 : f32 to vector<8x128xf32>
    %7 = arith.mulf %6, %5 : vector<8x128xf32>
    %cst_6 = arith.constant 0.707106769 : f32
    %8 = vector.broadcast %cst_6 : f32 to vector<8x128xf32>
    %9 = arith.mulf %5, %8 : vector<8x128xf32>
    %10 = math.erf %9 : vector<8x128xf32>
    %cst_7 = arith.constant 1.000000e+00 : f32
    %11 = vector.broadcast %cst_7 : f32 to vector<8x128xf32>
    %12 = arith.addf %11, %10 : vector<8x128xf32>
    %13 = arith.mulf %7, %12 : vector<8x128xf32>
    %c0_8 = arith.constant 0 : index
    %c0_9 = arith.constant 0 : index
    %14 = vector.load %arg4[%c0_8, %c0_9] : memref<128x128xf32, #tpu.memory_space<vmem>>, vector<128x128xf32>
    %cst_10 = arith.constant dense<0.000000e+00> : vector<8x128xf32>
    %15 = tpu.matmul %13, %14, %cst_10 {dimension_numbers = #tpu.dot_dimension_numbers<[1], [0], [0], [1], [0, 0, 1, 1], [], []>} : vector<8x128xf32>, vector<128x128xf32>, vector<8x128xf32> -> vector<8x128xf32>
    %c0_11 = arith.constant 0 : index
    %c0_12 = arith.constant 0 : index
    %16 = vector.load %arg5[%c0_11, %c0_12] : memref<1x128xf32, #tpu.memory_space<vmem>>, vector<1x128xf32>
    %17 = vector.broadcast %16 : vector<1x128xf32> to vector<8x128xf32>
    %18 = arith.addf %15, %17 : vector<8x128xf32>
    %19 = arith.addf %18, %5 : vector<8x128xf32>
    %cst_13 = arith.constant dense<0.000000e+00> : vector<8xf32>
    %20 = vector.multi_reduction <add>, %19, %cst_13 [1] : vector<8x128xf32> to vector<8xf32>
    %21 = vector.shape_cast %20 : vector<8xf32> to vector<8x1xf32>
    %cst_14 = arith.constant 1.280000e+02 : f32
    %22 = vector.broadcast %cst_14 : f32 to vector<8x1xf32>
    %23 = arith.divf %21, %22 : vector<8x1xf32>
    %24 = vector.broadcast %23 : vector<8x1xf32> to vector<8x128xf32>
    %25 = arith.subf %19, %24 : vector<8x128xf32>
    %26 = arith.mulf %25, %25 : vector<8x128xf32>
    %cst_15 = arith.constant dense<0.000000e+00> : vector<8xf32>
    %27 = vector.multi_reduction <add>, %26, %cst_15 [1] : vector<8x128xf32> to vector<8xf32>
    %28 = vector.shape_cast %27 : vector<8xf32> to vector<8x1xf32>
    %cst_16 = arith.constant 1.280000e+02 : f32
    %29 = vector.broadcast %cst_16 : f32 to vector<8x1xf32>
    %30 = arith.divf %28, %29 : vector<8x1xf32>
    %cst_17 = arith.constant 9.99999974E-6 : f32
    %31 = vector.broadcast %cst_17 : f32 to vector<8x1xf32>
    %32 = arith.addf %30, %31 : vector<8x1xf32>
    %33 = math.rsqrt %32 : vector<8x1xf32>
    %34 = vector.broadcast %33 : vector<8x1xf32> to vector<8x128xf32>
    %35 = arith.mulf %25, %34 : vector<8x128xf32>
    %c0_18 = arith.constant 0 : index
    %c0_19 = arith.constant 0 : index
    %36 = vector.load %arg6[%c0_18, %c0_19] : memref<1x128xf32, #tpu.memory_space<vmem>>, vector<1x128xf32>
    %37 = vector.broadcast %36 : vector<1x128xf32> to vector<8x128xf32>
    %38 = arith.mulf %35, %37 : vector<8x128xf32>
    %c0_20 = arith.constant 0 : index
    %c0_21 = arith.constant 0 : index
    %39 = vector.load %arg7[%c0_20, %c0_21] : memref<1x128xf32, #tpu.memory_space<vmem>>, vector<1x128xf32>
    %40 = vector.broadcast %39 : vector<1x128xf32> to vector<8x128xf32>
    %41 = arith.addf %38, %40 : vector<8x128xf32>
    %c0_22 = arith.constant 0 : index
    %c0_23 = arith.constant 0 : index
    %42 = vector.load %arg8[%c0_22, %c0_23] : memref<8x128xf32, #tpu.memory_space<vmem>>, vector<8x128xf32>
    tpu.vector_store %arg8[%c0_22, %c0_23], %41 {strides = array<i32>} : memref<8x128xf32, #tpu.memory_space<vmem>>, vector<8x128xf32>,
    return
  }
  func.func @transform_0(%arg0: i32) -> (i32, i32) {
    %c0_i32 = arith.constant 0 : i32
    %c0_i32_0 = arith.constant 0 : i32
    return %arg0, %c0_i32 : i32, i32
  }
  func.func @transform_1(%arg0: i32) -> (i32, i32) {
    %c0_i32 = arith.constant 0 : i32
    %c0_i32_0 = arith.constant 0 : i32
    %c0_i32_1 = arith.constant 0 : i32
    return %c0_i32, %c0_i32_0 : i32, i32
  }
  func.func @transform_2(%arg0: i32) -> (i32, i32) {
    %c0_i32 = arith.constant 0 : i32
    %c0_i32_0 = arith.constant 0 : i32
    %c0_i32_1 = arith.constant 0 : i32
    return %c0_i32, %c0_i32_0 : i32, i32
  }
  func.func @transform_3(%arg0: i32) -> (i32, i32) {
    %c0_i32 = arith.constant 0 : i32
    %c0_i32_0 = arith.constant 0 : i32
    %c0_i32_1 = arith.constant 0 : i32
    return %c0_i32, %c0_i32_0 : i32, i32
  }
  func.func @transform_4(%arg0: i32) -> (i32, i32) {
    %c0_i32 = arith.constant 0 : i32
    %c0_i32_0 = arith.constant 0 : i32
    %c0_i32_1 = arith.constant 0 : i32
    return %c0_i32, %c0_i32_0 : i32, i32
  }
  func.func @transform_5(%arg0: i32) -> (i32, i32) {
    %c0_i32 = arith.constant 0 : i32
    %c0_i32_0 = arith.constant 0 : i32
    %c0_i32_1 = arith.constant 0 : i32
    return %c0_i32, %c0_i32_0 : i32, i32
  }
  func.func @transform_6(%arg0: i32) -> (i32, i32) {
    %c0_i32 = arith.constant 0 : i32
    %c0_i32_0 = arith.constant 0 : i32
    %c0_i32_1 = arith.constant 0 : i32
    return %c0_i32, %c0_i32_0 : i32, i32
  }
  func.func @transform_7(%arg0: i32) -> (i32, i32) {
    %c0_i32 = arith.constant 0 : i32
    %c0_i32_0 = arith.constant 0 : i32
    return %arg0, %c0_i32 : i32, i32
  }
}

</mosaic_0001>

<bundles_post_ra>
// kernel: tpu_custom_call.1
= control target key start
LH: loop header
LB: loop body
LE: loop exit
PB: predicated region body
PF: predicated region fallthrough
CT: control target
= control target key end

     0   :  { %12 = vsyncpa [#allocation3], 0  ;;  %s438_s0 = inlined_call_operand.hbm [shape: f32[8,32], index: 0, kind: input, shape index: {}]   ;;  %s439_s1 = inlined_call_operand.hbm [shape: f32[32,128], index: 1, kind: input, shape index: {}]   ;;  %s440_s2 = inlined_call_operand.vmem [shape: f32[1,128], index: 2, kind: input, shape index: {}]   ;;  %s441_s3 = inlined_call_operand.hbm [shape: f32[128,128], index: 3, kind: input, shape index: {}]   ;;  %s442_s4 = inlined_call_operand.vmem [shape: f32[1,128], index: 4, kind: input, shape index: {}]   ;;  %s443_s5 = inlined_call_operand.vmem [shape: f32[1,128], index: 5, kind: input, shape index: {}]   ;;  %s444_s6 = inlined_call_operand.vmem [shape: f32[1,128], index: 6, kind: input, shape index: {}]   ;;  %s445_s7 = inlined_call_operand.hbm [shape: f32[8,128], index: 7, kind: output, shape index: {}]  }
   0x1   :  { %13 = vsyncpa [#allocation6], 0  ;;  %s30_s26 = sshll.u32 %s439_s1, 4  ;;  %s31_s26 = int_to_ptr.hbm [resolvable:$true] %s30_s26 }
   0x2   :  { %14 = vsyncpa [#allocation4], 0  ;;  %s367_s27 = smov [#allocation5]   ;;  %s20_s8 = sshll.u32 %s438_s0, 4  ;;  %s21_s8 = int_to_ptr.hbm [resolvable:$true] %s20_s8 }
   0x3   :  { %s32_s28 = sshll.u32 %s367_s27, 4  ;;  %s368_s9 = smov 128   ;;  %s33_s28 = int_to_ptr.vmem [resolvable:$true] %s32_s28 }
   0x4   :  { %s369_s10 = smov 8   ;;  %s370_s11 = smov [#allocation2]  }
   0x5   :  { %38 = dma.hbm_to_vmem [thread:$0]  %s31_s26, 512, %s33_s28, [#allocation6], %s368_s9, %s368_s9, %s369_s10  }
   0x6   :  { %s22_s12 = sshll.u32 %s370_s11, 4  ;;  %s45_s15 = sshll.u32 %s441_s3, 4  ;;  %s23_s12 = int_to_ptr.vmem [resolvable:$true] %s22_s12  ;;  %s46_s15 = int_to_ptr.hbm [resolvable:$true] %s45_s15 }
   0x7   :  { %25 = dma.hbm_to_vmem [thread:$0]  %s21_s8, 128, %s23_s12, [#allocation3]  }
   0x8   :  { %s371_s1 = smov [#allocation7]  }
   0x9   :  { %s47_s16 = sshll.u32 %s371_s1, 4  ;;  %s48_s16 = int_to_ptr.vmem [resolvable:$true] %s47_s16 }
   0xa   :  { %53 = dma.hbm_to_vmem [thread:$0]  %s46_s15, 2048, %s48_s16, [#allocation6], %s368_s9, %s368_s9, %s369_s10  }
   0xb   :  { %361 = dma.done.wait [#allocation3], 128  }
   0xc   :  { %362 = vsyncadd [#allocation3], 4294967168 }
   0xd   :  { %363 = dma.done.wait [#allocation6], 2560  }
   0xe   :  { %364 = vsyncadd [#allocation6], 4294964736  ;;  %v76_v0 = vld [vmem:[#allocation5 + $0x18] sm:$0xff]  ;;  %v75_v1 = vld [vmem:[#allocation5 + $0x10] sm:$0xff]  ;;  %vm81_vm0 = vcmask 261120   ;;  %s373_s21 = smov [#allocation8]  }
   0xf   :  { %97 = vmatpush.msra.mxu0 %v76_v0  ;;  %v74_v2 = vld [vmem:[#allocation5 + $0x8] sm:$0xff]  ;;  %v73_v3 = vld [vmem:[#allocation5] sm:$0xff]  ;;  %v72_v4 = vld [vmem:[#allocation2] sm:$0xff]  ;;  %s233_s22 = sshll.u32 %s373_s21, 4  ;;  %s235_s25 = sshll.u32 %s445_s7, 4  ;;  %s234_s22 = int_to_ptr.vmem [resolvable:$true] %s233_s22  ;;  %s236_s25 = int_to_ptr.hbm [resolvable:$true] %s235_s25 }
  0x10   :  { %v164_v5 = vld [vmem:[#allocation7 + $0x78] sm:$0xff]  ;;  %v163_v6 = vld [vmem:[#allocation7 + $0x70] sm:$0xff]  ;;  %v162_v7 = vld [vmem:[#allocation7 + $0x68] sm:$0xff] }
  0x11   :  { %98 = vmatpush.msra.mxu0 %v75_v1  ;;  %169 = vmatpush.msra.mxu1 %v164_v5  ;;  %v161_v8 = vld [vmem:[#allocation7 + $0x60] sm:$0xff]  ;;  %v160_v9 = vld [vmem:[#allocation7 + $0x58] sm:$0xff]  ;;  %v159_v10 = vld [vmem:[#allocation7 + $0x50] sm:$0xff] }
  0x12   :  { %v158_v11 = vld [vmem:[#allocation7 + $0x48] sm:$0xff]  ;;  %v157_v12 = vld [vmem:[#allocation7 + $0x40] sm:$0xff]  ;;  %v156_v13 = vld [vmem:[#allocation7 + $0x38] sm:$0xff] }
  0x13   :  { %99 = vmatpush.msra.mxu0 %v74_v2  ;;  %170 = vmatpush.msra.mxu1 %v163_v6  ;;  %v155_v14 = vld [vmem:[#allocation7 + $0x30] sm:$0xff]  ;;  %v154_v15 = vld [vmem:[#allocation7 + $0x28] sm:$0xff]  ;;  %v153_v16 = vld [vmem:[#allocation7 + $0x20] sm:$0xff] }
  0x14   :  { %v255_v17 = vld [vmem:[%s440_s2] ss:$0 sm:$0xff]  ;;  %v151_v19 = vld [vmem:[#allocation7 + $0x10] sm:$0xff]  ;;  %v150_v22 = vld [vmem:[#allocation7 + $0x8] sm:$0xff] }
  0x15   :  { %100 = vmatpush.msra.mxu0 %v73_v3  ;;  %171 = vmatpush.msra.mxu1 %v162_v7  ;;  %v152_v18 = vld [vmem:[#allocation7 + $0x18] sm:$0xff]  ;;  %v149_v24 = vld [vmem:[#allocation7] sm:$0xff]  ;;  %v372_v3 = vmov 128.0  }
  0x16   :  { %246 = vmatmul.msk.f32.vlgmr.msra.gmra.mxu0 %vm81_vm0, %v72_v4  ;;  %v256_v63 = vld [vmem:[%s442_s4] ss:$0 sm:$0xff] }
  0x17   :  { %172 = vmatpush.msra.mxu1 %v161_v8 }
  0x19   :  { %173 = vmatpush.msra.mxu1 %v160_v9 }
  0x1b   :  { %174 = vmatpush.msra.mxu1 %v159_v10 }
  0x1d   :  { %175 = vmatpush.msra.mxu1 %v158_v11 }
  0x1f   :  { %176 = vmatpush.msra.mxu1 %v157_v12 }
  0x21   :  { %177 = vmatpush.msra.mxu1 %v156_v13 }
  0x23   :  { %178 = vmatpush.msra.mxu1 %v155_v14 }
  0x25   :  { %179 = vmatpush.msra.mxu1 %v154_v15 }
  0x27   :  { %180 = vmatpush.msra.mxu1 %v153_v16 }
  0x29   :  { %181 = vmatpush.msra.mxu1 %v152_v18 }
  0x2b   :  { %182 = vmatpush.msra.mxu1 %v151_v19 }
  0x2d   :  { %183 = vmatpush.msra.mxu1 %v150_v22 }
  0x2f   :  { %184 = vmatpush.msra.mxu1 %v149_v24 }
  0x93   :  { %v102_v20 = vpop.f32.mrf.mxu0 }
  0x94   :  { %v103_v21 = vadd.f32 %v255_v17, %v102_v20 }
  0x96   :  { %v106_v23 = vmul.f32 0.70710677, %v103_v21  ;;  %v105_v60 = vmul.f32 0.5, %v103_v21 }
  0x98   :  { %v107_v25 = vmul.f32 %v106_v23, %v106_v23 }
  0x9a   :  { %v108_v26 = vmin.f32 %v107_v25, 16.0 }
  0x9c   :  { %v109_v27 = vmul.f32 2.1237322e-06, %v108_v26  ;;  %v120_v28 = vmul.f32 3.8918573e-05, %v108_v26 }
  0x9e   :  { %v110_v29 = vadd.f32 0.00028619796, %v109_v27  ;;  %v121_v30 = vadd.f32 0.001143296, %v120_v28 }
  0xa0   :  { %v111_v31 = vmul.f32 %v110_v29, %v108_v26  ;;  %v122_v32 = vmul.f32 %v121_v30, %v108_v26 }
  0xa2   :  { %v123_v33 = vadd.f32 0.014752088, %v122_v32  ;;  %v112_v34 = vadd.f32 0.0036580483, %v111_v31 }
  0xa4   :  { %v124_v35 = vmul.f32 %v123_v33, %v108_v26  ;;  %v113_v37 = vmul.f32 %v112_v34, %v108_v26 }
  0xa6   :  { %v125_v36 = vadd.f32 0.112945676, %v124_v35  ;;  %v114_v40 = vadd.f32 0.05243302, %v113_v37 }
  0xa8   :  { %v126_v38 = vmul.f32 %v125_v36, %v108_v26  ;;  %v115_v43 = vmul.f32 %v114_v40, %v108_v26 }
  0xaa   :  { %v127_v39 = vadd.f32 0.4994258, %v126_v38  ;;  %v116_v44 = vadd.f32 0.18741608, %v115_v43 }
  0xac   :  { %v128_v41 = vmul.f32 %v127_v39, %v108_v26  ;;  %v117_v46 = vmul.f32 %v116_v44, %v108_v26  ;;  %v258_v26 = vld [vmem:[%s444_s6] ss:$0 sm:$0xff] }
  0xae   :  { %v129_v42 = vadd.f32 1.0, %v128_v41  ;;  %v118_v50 = vadd.f32 1.1283791, %v117_v46 }
  0xb0   :  { %259 = vrcp.f32 %v129_v42  ;;  %v141_v49 = vand.u32 2147483648, %v129_v42  ;;  %v139_v52 = vand.u32 2147483647, %v129_v42  ;;  %vm135_vm2 = vweird.f32 %v129_v42 }
  0xb1   :  { %v119_v55 = vmul.f32 %v118_v50, %v106_v23  ;;  %261 = vrcp.f32 %v372_v3  ;;  %v257_v23 = vld [vmem:[%s443_s5] ss:$0 sm:$0xff] }
  0xb2   :  { %v142_v54 = vor.u32 1.1754944e-38, %v141_v49  ;;  %vm140_vm4 = vcmp.eq.f32.partialorder %v139_v52, 8.507059e+37 }
  0xb6   :  { %v260_v45 = vpop.eup %259 }
  0xb7   :  { %v131_v47 = vmul.f32 %v260_v45, %v129_v42  ;;  %vm136_vm1 = vweird.f32 %v260_v45  ;;  %v262_v4 = vpop.eup %261 }
  0xb8   :  { %vm137_vm3 = vmor %vm135_vm2, %vm136_vm1  ;;  %v193_v5 = vmul.f32 128.0, %v262_v4  ;;  %vm197_vm5 = vweird.f32 %v262_v4 }
  0xb9   :  { %v132_v48 = vsub.f32 1.0, %v131_v47 }
  0xba   :  { %v194_v6 = vsub.f32 1.0, %v193_v5 }
  0xbb   :  { %v133_v51 = vmul.f32 %v260_v45, %v132_v48 }
  0xbc   :  { %v195_v7 = vmul.f32 %v262_v4, %v194_v6 }
  0xbd   :  { %v134_v53 = vadd.f32 %v260_v45, %v133_v51 }
  0xbe   :  { %v196_v8 = vadd.f32 %v262_v4, %v195_v7 }
  0xbf   :  { %v138_v56 = vsel %vm137_vm3, %v260_v45, %v134_v53 }
  0xc0   :  { %v143_v57 = vsel %vm140_vm4, %v142_v54, %v138_v56  ;;  %v198_v9 = vsel %vm197_vm5, %v262_v4, %v196_v8 }
  0xc1   :  { %v144_v58 = vmul.f32 %v143_v57, %v119_v55 }
  0xc3   :  { %v247_v59 = vclamps-f32 %v144_v58, 1.0 }
  0xc5   :  { %v147_v61 = vadd.f32 1.0, %v247_v59 }
  0xc7   :  { %v148_v62 = vmul.f32 %v147_v61, %v105_v60 }
  0xc9   :  { %185 = vmatmul.f32.vlgmr.msra.gmra.mxu1 %v148_v62 }
 0x146   :  { %v186_v0 = vpop.f32.mrf.mxu1 }
 0x147   :  { %v187_v1 = vadd.f32 %v256_v63, %v186_v0 }
 0x149   :  { %v189_v2 = vadd.f32 %v187_v1, %v103_v21 }
 0x14b   :  { %190 = vadd.xlane.f32.xlu0 %v189_v2 }
 0x1be   :  { %v191_v10 = vpop.xlane.xlu0 %190 }
 0x1bf   :  { %v199_v11 = vmul.f32 %v198_v9, %v191_v10 }
 0x1c1   :  { %v200_v12 = vsub.f32 %v189_v2, %v199_v11 }
 0x1c3   :  { %v201_v13 = vmul.f32 %v200_v12, %v200_v12 }
 0x1c5   :  { %202 = vadd.xlane.f32.xlu0 %v201_v13 }
 0x238   :  { %v203_v14 = vpop.xlane.xlu0 %202 }
 0x239   :  { %v204_v15 = vmul.f32 %v203_v14, %v198_v9 }
 0x23b   :  { %v205_v16 = vadd.f32 1e-05, %v204_v15 }
 0x23d   :  { %263 = vrsqrt.f32 %v205_v16  ;;  %vm212_vm7 = vweird.f32 %v205_v16 }
 0x243   :  { %v264_v17 = vpop.eup %263 }
 0x244   :  { %v207_v18 = vmul.f32 %v264_v17, %v205_v16  ;;  %vm213_vm6 = vweird.f32 %v264_v17 }
 0x245   :  { %vm214_vm8 = vmor %vm212_vm7, %vm213_vm6 }
 0x246   :  { %v208_v19 = vmul.f32 %v264_v17, %v207_v18 }
 0x248   :  { %v209_v20 = vmul.f32 0.5, %v208_v19 }
 0x24a   :  { %v210_v21 = vsub.f32 1.5, %v209_v20 }
 0x24c   :  { %v211_v22 = vmul.f32 %v264_v17, %v210_v21 }
 0x24e   :  { %v215_v24 = vsel %vm214_vm8, %v264_v17, %v211_v22 }
 0x24f   :  { %v216_v25 = vmul.f32 %v215_v24, %v200_v12 }
 0x251   :  { %v221_v27 = vmul.f32 %v257_v23, %v216_v25 }
 0x253   :  { %v226_v28 = vadd.f32 %v258_v26, %v221_v27 }
 0x255   :  { %227 = vst [vmem:[#allocation8] sm:$0xff] %v226_v28 }
 0x256   :  { %238 = dma.vmem_to_hbm [thread:$0]  %s234_s22, 128, %s236_s25, [#allocation4]  }
 0x257   :  { %365 = dma.done.wait [#allocation4], 128  }
 0x258   :  { %366 = vsyncadd [#allocation4], 4294967168 }
 0x259   :  { %243 = vsyncpa [#allocation3], 1 }
 0x25a   :  { %244 = vsyncpa [#allocation6], 1 }
 0x25b   :  { %245 = vsyncpa [#allocation4], 1 }

</bundles_post_ra>
